<compile_context>
chip_gen: v7x
topology: tpu7x:2x2x1
jax: 0.10.0
libtpu: 0.0.40
codegen_flags: <defaults>
</compile_context>

<pallas_src>
import jax
import jax.numpy as jnp
from jax.experimental import pallas as pl
from jax.experimental.pallas import tpu as pltpu


def _flash_attn_kernel(q_ref, k_ref, v_ref, o_ref, m_scr, l_scr, acc_scr):
    """Causal flash attention over pre-projected, pre-scaled q/k/v tiles."""
    qi = pl.program_id(1)
    ki = pl.program_id(2)

    @pl.when(ki == 0)
    def _init():
        m_scr[...] = jnp.full(m_scr.shape, -jnp.inf, m_scr.dtype)
        l_scr[...] = jnp.zeros(l_scr.shape, l_scr.dtype)
        acc_scr[...] = jnp.zeros(acc_scr.shape, acc_scr.dtype)

    def kv_step(apply_causal_mask):
        # s = q @ k^T, contracting on H without materializing k.T.
        s = jax.lax.dot_general(
            q_ref[...], k_ref[...], (((1,), (1,)), ((), ())),
            preferred_element_type=jnp.float32)              # (tq, tk) f32

        if apply_causal_mask:
            # Only the diagonal tile needs masking (tq == tk, aligned tiles),
            # so local indices suffice: keep where row >= col.
            tq, tk = s.shape
            row = jax.lax.broadcasted_iota(jnp.int32, (tq, tk), 0)
            col = jax.lax.broadcasted_iota(jnp.int32, (tq, tk), 1)
            s = jnp.where(row >= col, s, -jnp.inf)

        # Online (flash) softmax update; stats stay f32.
        m_prev = m_scr[...]
        m_new = jnp.maximum(m_prev, jnp.max(s, axis=-1, keepdims=True))
        alpha = jnp.exp(m_prev - m_new)
        p = jnp.exp(s - m_new)
        l_scr[...] = alpha * l_scr[...] + jnp.sum(p, axis=-1, keepdims=True)
        acc_scr[...] = alpha * acc_scr[...] + jnp.dot(
            p.astype(v_ref.dtype), v_ref[...],
            preferred_element_type=jnp.float32)
        m_scr[...] = m_new

    @pl.when(ki < qi)
    def _off_diag():
        kv_step(apply_causal_mask=False)

    @pl.when(ki == qi)
    def _diag_and_finalize():
        kv_step(apply_causal_mask=True)
        # The diagonal tile is the last one that contributes to this q-tile
        # (ki > qi is fully masked), so finalize here.  Exact divide, once per
        # q-tile — negligible cost, closer to the PyTorch reference than an
        # approximate reciprocal.  l > 0 always (the diagonal is unmasked).
        o_ref[...] = (acc_scr[...] / l_scr[...]).astype(o_ref.dtype)

    # ki > qi: fully masked — no compute, and the clamped k/v index_map means
    # no DMA either.


def head_forward(x, w_k, w_q, w_v, *, block_len=256, mxu_dtype=None):
    """Single attention head.  x: [B, T, E]; w_*: [E, H]; returns [B, T, H]."""
    B, T, E = x.shape
    H = w_k.shape[1]

    # Equal, aligned q/kv tiles (required by the diagonal-tile masking logic).
    tq = min(T, block_len)
    tk = tq
    assert T % tq == 0, "sequence length must be a multiple of the tile size"
    nq = T // tq
    nk = T // tk

    # Hoist the projections out of the kernel: one near-peak XLA matmul each,
    # instead of re-projecting every K/V tile once per q-tile inside the loop.
    # Fold the 1/sqrt(E) softmax scale into W_q (positive scale, so the
    # mask-before-scale order of the PyTorch module is preserved: -inf stays
    # -inf).
    scale = 1.0 / jnp.sqrt(jnp.float32(E))
    w_q_scaled = (w_q.astype(jnp.float32) * scale).astype(w_q.dtype)
    q = jnp.dot(x, w_q_scaled)
    k = jnp.dot(x, w_k)
    v = jnp.dot(x, w_v)
    if mxu_dtype is not None:
        # v6e/v7x: feed the in-kernel MXU matmuls bf16 operands (full-rate MXU,
        # half the q/k/v DMA bytes).  Softmax stats stay f32 inside the kernel.
        q, k, v = (t.astype(mxu_dtype) for t in (q, k, v))

    def q_map(b, qi, ki):
        return (b, qi, 0)

    def kv_map(b, qi, ki):
        # Clamp so causally-skipped steps (ki > qi) keep the same block index
        # as the diagonal step -> the pipeline dedupes the DMA, no HBM traffic
        # for fully-masked tiles.
        return (b, jnp.minimum(ki, qi), 0)

    # TODO(synk): dropout (p=0.2) on the attention matrix is a no-op in eval
    # mode; training-mode dropout via pltpu.prng_random_bits not implemented.

    return pl.pallas_call(
        _flash_attn_kernel,
        out_shape=jax.ShapeDtypeStruct((B, T, H), x.dtype),
        grid_spec=pltpu.PrefetchScalarGridSpec(
            num_scalar_prefetch=0,
            grid=(B, nq, nk),
            in_specs=[
                pl.BlockSpec((pl.Squeezed(), tq, H), q_map),
                pl.BlockSpec((pl.Squeezed(), tk, H), kv_map),
                pl.BlockSpec((pl.Squeezed(), tk, H), kv_map),
            ],
            out_specs=pl.BlockSpec((pl.Squeezed(), tq, H), q_map),
            scratch_shapes=[
                pltpu.VMEM((tq, 1), jnp.float32),   # running max m
                pltpu.VMEM((tq, 1), jnp.float32),   # running denom l
                pltpu.VMEM((tq, H), jnp.float32),   # output accumulator
            ],
        ),
        compiler_params=pltpu.CompilerParams(
            dimension_semantics=("parallel", "parallel", "arbitrary"),
            vmem_limit_bytes=32 * 1024 * 1024,
        ),
    )(q, k, v)


def reference_forward(x, w_k, w_q, w_v):
    """Pure-JAX reference (eval-mode dropout = identity)."""
    B, T, E = x.shape
    k = x @ w_k
    q = x @ w_q
    v = x @ w_v
    s = q @ jnp.swapaxes(k, -2, -1)
    mask = jnp.tril(jnp.ones((T, T), dtype=bool))
    s = jnp.where(mask, s, -jnp.inf)
    s = s / jnp.sqrt(jnp.float32(E))
    w = jax.nn.softmax(s, axis=-1)
    return w @ v


def _run_case(key, B, T, E, H, mxu_dtype=None, atol=5e-3, rtol=5e-3):
    kx, kk, kq, kv = jax.random.split(key, 4)
    x = jax.random.normal(kx, (B, T, E), dtype=jnp.float32)
    # Deterministic init mimicking nn.Linear's U(-1/sqrt(E), 1/sqrt(E)),
    # stored pre-transposed as [E, H].
    bound = 1.0 / jnp.sqrt(jnp.float32(E))
    w_k = jax.random.uniform(kk, (E, H), jnp.float32, -bound, bound)
    w_q = jax.random.uniform(kq, (E, H), jnp.float32, -bound, bound)
    w_v = jax.random.uniform(kv, (E, H), jnp.float32, -bound, bound)

    out = head_forward(x, w_k, w_q, w_v, mxu_dtype=mxu_dtype)
    jax.block_until_ready(out)

    ref = reference_forward(x, w_k, w_q, w_v)
    assert out.shape == (B, T, H)
    err = float(jnp.max(jnp.abs(out - ref)))
    assert jnp.allclose(out, ref, atol=atol, rtol=rtol), (
        f"mismatch vs reference (T={T}, mxu_dtype={mxu_dtype}, "
        f"max abs err {err})")


if __name__ == "__main__":
    key = jax.random.PRNGKey(0)
    k1, k2, k3 = jax.random.split(key, 3)

    # Small shape consistent with the module (single-tile path).
    _run_case(k1, B=2, T=8, E=32, H=16)
    # Multi-tile path (256-wide tiles, 2x2 grid): exercises causal tile
    # skipping, off-diagonal/diagonal tiles, clamped k/v index_map.
    _run_case(k2, B=2, T=512, E=32, H=16)
    # Same, with bf16 MXU operands (the v6e/v7x fast path); looser tolerance.
    _run_case(k3, B=2, T=512, E=32, H=16, mxu_dtype=jnp.bfloat16,
              atol=3e-2, rtol=3e-2)

    print("KERNEL_OK")
</pallas_src>

<mosaic_0001>
module attributes {stable_mosaic.version = 11 : i64} {
  func.func @_flash_attn_kernel(%arg0: i32, %arg1: i32, %arg2: i32, %arg3: memref<1x8x16xf32, #tpu.memory_space<vmem>>, %arg4: memref<1x8x16xf32, #tpu.memory_space<vmem>>, %arg5: memref<1x8x16xf32, #tpu.memory_space<vmem>>, %arg6: memref<1x8x16xf32, #tpu.memory_space<vmem>>, %arg7: memref<8x1xf32, #tpu.memory_space<vmem>>, %arg8: memref<8x1xf32, #tpu.memory_space<vmem>>, %arg9: memref<8x16xf32, #tpu.memory_space<vmem>>) attributes {dimension_semantics = [#tpu.dimension_semantics<parallel>, #tpu.dimension_semantics<parallel>, #tpu.dimension_semantics<arbitrary>], iteration_bounds = array<i64: 2, 1, 1>, scalar_prefetch = 0 : i64, scratch_operands = 3 : i64, tpu.core_type = #tpu.core_type<tc>, window_params = [{transform_indices = @transform_0, window_bounds = array<i64: 1, 8, 16>}, {transform_indices = @transform_1, window_bounds = array<i64: 1, 8, 16>}, {transform_indices = @transform_2, window_bounds = array<i64: 1, 8, 16>}, {transform_indices = @transform_3, window_bounds = array<i64: 1, 8, 16>}]} {
    %c0_i32 = arith.constant 0 : i32
    %0 = arith.cmpi eq, %arg2, %c0_i32 : i32
    %1 = arith.extui %0 : i1 to i32
    %c0_i32_0 = arith.constant 0 : i32
    %2 = arith.cmpi ne, %1, %c0_i32_0 : i32
    scf.if %2 {
      %cst = arith.constant 0xFF800000 : f32
      %9 = vector.broadcast %cst : f32 to vector<8x1xf32>
      %c0 = arith.constant 0 : index
      %c0_3 = arith.constant 0 : index
      %10 = vector.load %arg7[%c0, %c0_3] : memref<8x1xf32, #tpu.memory_space<vmem>>, vector<8x1xf32>
      tpu.vector_store %arg7[%c0, %c0_3], %9 {strides = array<i32>} : memref<8x1xf32, #tpu.memory_space<vmem>>, vector<8x1xf32>,
      %cst_4 = arith.constant 0.000000e+00 : f32
      %11 = vector.broadcast %cst_4 : f32 to vector<8x1xf32>
      %c0_5 = arith.constant 0 : index
      %c0_6 = arith.constant 0 : index
      %12 = vector.load %arg8[%c0_5, %c0_6] : memref<8x1xf32, #tpu.memory_space<vmem>>, vector<8x1xf32>
      tpu.vector_store %arg8[%c0_5, %c0_6], %11 {strides = array<i32>} : memref<8x1xf32, #tpu.memory_space<vmem>>, vector<8x1xf32>,
      %cst_7 = arith.constant 0.000000e+00 : f32
      %13 = vector.broadcast %cst_7 : f32 to vector<8x16xf32>
      %c0_8 = arith.constant 0 : index
      %c0_9 = arith.constant 0 : index
      %14 = vector.load %arg9[%c0_8, %c0_9] : memref<8x16xf32, #tpu.memory_space<vmem>>, vector<8x16xf32>
      tpu.vector_store %arg9[%c0_8, %c0_9], %13 {strides = array<i32>} : memref<8x16xf32, #tpu.memory_space<vmem>>, vector<8x16xf32>,
    } else {
    }
    %3 = arith.cmpi slt, %arg2, %arg1 : i32
    %4 = arith.extui %3 : i1 to i32
    %c0_i32_1 = arith.constant 0 : i32
    %5 = arith.cmpi ne, %4, %c0_i32_1 : i32
    scf.if %5 {
      %c0 = arith.constant 0 : index
      %c0_3 = arith.constant 0 : index
      %c0_4 = arith.constant 0 : index
      %9 = vector.load %arg3[%c0, %c0_3, %c0_4] : memref<1x8x16xf32, #tpu.memory_space<vmem>>, vector<1x8x16xf32>
      %10 = vector.shape_cast %9 : vector<1x8x16xf32> to vector<8x16xf32>
      %c0_5 = arith.constant 0 : index
      %c0_6 = arith.constant 0 : index
      %c0_7 = arith.constant 0 : index
      %11 = vector.load %arg4[%c0_5, %c0_6, %c0_7] : memref<1x8x16xf32, #tpu.memory_space<vmem>>, vector<1x8x16xf32>
      %12 = vector.shape_cast %11 : vector<1x8x16xf32> to vector<8x16xf32>
      %cst = arith.constant dense<0.000000e+00> : vector<8x8xf32>
      %13 = tpu.matmul %10, %12, %cst {dimension_numbers = #tpu.dot_dimension_numbers<[1], [1], [0], [0], [0, 0, 1, 0], [], []>} : vector<8x16xf32>, vector<8x16xf32>, vector<8x8xf32> -> vector<8x8xf32>
      %c0_8 = arith.constant 0 : index
      %c0_9 = arith.constant 0 : index
      %14 = vector.load %arg7[%c0_8, %c0_9] : memref<8x1xf32, #tpu.memory_space<vmem>>, vector<8x1xf32>
      %cst_10 = arith.constant dense<0xFF800000> : vector<8xf32>
      %15 = vector.multi_reduction <maximumf>, %13, %cst_10 [1] : vector<8x8xf32> to vector<8xf32>
      %16 = vector.shape_cast %15 : vector<8xf32> to vector<8x1xf32>
      %17 = arith.maximumf %14, %16 : vector<8x1xf32>
      %18 = arith.subf %14, %17 : vector<8x1xf32>
      %19 = math.exp %18 : vector<8x1xf32>
      %20 = vector.broadcast %17 : vector<8x1xf32> to vector<8x8xf32>
      %21 = arith.subf %13, %20 : vector<8x8xf32>
      %22 = math.exp %21 : vector<8x8xf32>
      %c0_11 = arith.constant 0 : index
      %c0_12 = arith.constant 0 : index
      %23 = vector.load %arg8[%c0_11, %c0_12] : memref<8x1xf32, #tpu.memory_space<vmem>>, vector<8x1xf32>
      %24 = arith.mulf %19, %23 : vector<8x1xf32>
      %cst_13 = arith.constant dense<0.000000e+00> : vector<8xf32>
      %25 = vector.multi_reduction <add>, %22, %cst_13 [1] : vector<8x8xf32> to vector<8xf32>
      %26 = vector.shape_cast %25 : vector<8xf32> to vector<8x1xf32>
      %27 = arith.addf %24, %26 : vector<8x1xf32>
      %c0_14 = arith.constant 0 : index
      %c0_15 = arith.constant 0 : index
      %28 = vector.load %arg8[%c0_14, %c0_15] : memref<8x1xf32, #tpu.memory_space<vmem>>, vector<8x1xf32>
      tpu.vector_store %arg8[%c0_14, %c0_15], %27 {strides = array<i32>} : memref<8x1xf32, #tpu.memory_space<vmem>>, vector<8x1xf32>,
      %c0_16 = arith.constant 0 : index
      %c0_17 = arith.constant 0 : index
      %29 = vector.load %arg9[%c0_16, %c0_17] : memref<8x16xf32, #tpu.memory_space<vmem>>, vector<8x16xf32>
      %30 = vector.broadcast %19 : vector<8x1xf32> to vector<8x16xf32>
      %31 = arith.mulf %30, %29 : vector<8x16xf32>
      %c0_18 = arith.constant 0 : index
      %c0_19 = arith.constant 0 : index
      %c0_20 = arith.constant 0 : index
      %32 = vector.load %arg5[%c0_18, %c0_19, %c0_20] : memref<1x8x16xf32, #tpu.memory_space<vmem>>, vector<1x8x16xf32>
      %33 = vector.shape_cast %32 : vector<1x8x16xf32> to vector<8x16xf32>
      %cst_21 = arith.constant dense<0.000000e+00> : vector<8x16xf32>
      %34 = tpu.matmul %22, %33, %cst_21 {dimension_numbers = #tpu.dot_dimension_numbers<[1], [0], [0], [1], [0, 0, 1, 1], [], []>} : vector<8x8xf32>, vector<8x16xf32>, vector<8x16xf32> -> vector<8x16xf32>
      %35 = arith.addf %31, %34 : vector<8x16xf32>
      %c0_22 = arith.constant 0 : index
      %c0_23 = arith.constant 0 : index
      %36 = vector.load %arg9[%c0_22, %c0_23] : memref<8x16xf32, #tpu.memory_space<vmem>>, vector<8x16xf32>
      tpu.vector_store %arg9[%c0_22, %c0_23], %35 {strides = array<i32>} : memref<8x16xf32, #tpu.memory_space<vmem>>, vector<8x16xf32>,
      %c0_24 = arith.constant 0 : index
      %c0_25 = arith.constant 0 : index
      %37 = vector.load %arg7[%c0_24, %c0_25] : memref<8x1xf32, #tpu.memory_space<vmem>>, vector<8x1xf32>
      tpu.vector_store %arg7[%c0_24, %c0_25], %17 {strides = array<i32>} : memref<8x1xf32, #tpu.memory_space<vmem>>, vector<8x1xf32>,
    } else {
    }
    %6 = arith.cmpi eq, %arg2, %arg1 : i32
    %7 = arith.extui %6 : i1 to i32
    %c0_i32_2 = arith.constant 0 : i32
    %8 = arith.cmpi ne, %7, %c0_i32_2 : i32
    scf.if %8 {
      %c0 = arith.constant 0 : index
      %c0_3 = arith.constant 0 : index
      %c0_4 = arith.constant 0 : index
      %9 = vector.load %arg3[%c0, %c0_3, %c0_4] : memref<1x8x16xf32, #tpu.memory_space<vmem>>, vector<1x8x16xf32>
      %10 = vector.shape_cast %9 : vector<1x8x16xf32> to vector<8x16xf32>
      %c0_5 = arith.constant 0 : index
      %c0_6 = arith.constant 0 : index
      %c0_7 = arith.constant 0 : index
      %11 = vector.load %arg4[%c0_5, %c0_6, %c0_7] : memref<1x8x16xf32, #tpu.memory_space<vmem>>, vector<1x8x16xf32>
      %12 = vector.shape_cast %11 : vector<1x8x16xf32> to vector<8x16xf32>
      %cst = arith.constant dense<0.000000e+00> : vector<8x8xf32>
      %13 = tpu.matmul %10, %12, %cst {dimension_numbers = #tpu.dot_dimension_numbers<[1], [1], [0], [0], [0, 0, 1, 0], [], []>} : vector<8x16xf32>, vector<8x16xf32>, vector<8x8xf32> -> vector<8x8xf32>
      %14 = tpu.iota {dimensions = array<i32: 0>} : vector<8x8xi32>
      %15 = tpu.iota {dimensions = array<i32: 1>} : vector<8x8xi32>
      %16 = arith.cmpi sge, %14, %15 : vector<8x8xi32>
      %cst_8 = arith.constant 0xFF800000 : f32
      %17 = vector.broadcast %cst_8 : f32 to vector<8x8xf32>
      %18 = arith.select %16, %13, %17 : vector<8x8xi1>, vector<8x8xf32>
      %c0_9 = arith.constant 0 : index
      %c0_10 = arith.constant 0 : index
      %19 = vector.load %arg7[%c0_9, %c0_10] : memref<8x1xf32, #tpu.memory_space<vmem>>, vector<8x1xf32>
      %cst_11 = arith.constant dense<0xFF800000> : vector<8xf32>
      %20 = vector.multi_reduction <maximumf>, %18, %cst_11 [1] : vector<8x8xf32> to vector<8xf32>
      %21 = vector.shape_cast %20 : vector<8xf32> to vector<8x1xf32>
      %22 = arith.maximumf %19, %21 : vector<8x1xf32>
      %23 = arith.subf %19, %22 : vector<8x1xf32>
      %24 = math.exp %23 : vector<8x1xf32>
      %25 = vector.broadcast %22 : vector<8x1xf32> to vector<8x8xf32>
      %26 = arith.subf %18, %25 : vector<8x8xf32>
      %27 = math.exp %26 : vector<8x8xf32>
      %c0_12 = arith.constant 0 : index
      %c0_13 = arith.constant 0 : index
      %28 = vector.load %arg8[%c0_12, %c0_13] : memref<8x1xf32, #tpu.memory_space<vmem>>, vector<8x1xf32>
      %29 = arith.mulf %24, %28 : vector<8x1xf32>
      %cst_14 = arith.constant dense<0.000000e+00> : vector<8xf32>
      %30 = vector.multi_reduction <add>, %27, %cst_14 [1] : vector<8x8xf32> to vector<8xf32>
      %31 = vector.shape_cast %30 : vector<8xf32> to vector<8x1xf32>
      %32 = arith.addf %29, %31 : vector<8x1xf32>
      %c0_15 = arith.constant 0 : index
      %c0_16 = arith.constant 0 : index
      %33 = vector.load %arg8[%c0_15, %c0_16] : memref<8x1xf32, #tpu.memory_space<vmem>>, vector<8x1xf32>
      tpu.vector_store %arg8[%c0_15, %c0_16], %32 {strides = array<i32>} : memref<8x1xf32, #tpu.memory_space<vmem>>, vector<8x1xf32>,
      %c0_17 = arith.constant 0 : index
      %c0_18 = arith.constant 0 : index
      %34 = vector.load %arg9[%c0_17, %c0_18] : memref<8x16xf32, #tpu.memory_space<vmem>>, vector<8x16xf32>
      %35 = vector.broadcast %24 : vector<8x1xf32> to vector<8x16xf32>
      %36 = arith.mulf %35, %34 : vector<8x16xf32>
      %c0_19 = arith.constant 0 : index
      %c0_20 = arith.constant 0 : index
      %c0_21 = arith.constant 0 : index
      %37 = vector.load %arg5[%c0_19, %c0_20, %c0_21] : memref<1x8x16xf32, #tpu.memory_space<vmem>>, vector<1x8x16xf32>
      %38 = vector.shape_cast %37 : vector<1x8x16xf32> to vector<8x16xf32>
      %cst_22 = arith.constant dense<0.000000e+00> : vector<8x16xf32>
      %39 = tpu.matmul %27, %38, %cst_22 {dimension_numbers = #tpu.dot_dimension_numbers<[1], [0], [0], [1], [0, 0, 1, 1], [], []>} : vector<8x8xf32>, vector<8x16xf32>, vector<8x16xf32> -> vector<8x16xf32>
      %40 = arith.addf %36, %39 : vector<8x16xf32>
      %c0_23 = arith.constant 0 : index
      %c0_24 = arith.constant 0 : index
      %41 = vector.load %arg9[%c0_23, %c0_24] : memref<8x16xf32, #tpu.memory_space<vmem>>, vector<8x16xf32>
      tpu.vector_store %arg9[%c0_23, %c0_24], %40 {strides = array<i32>} : memref<8x16xf32, #tpu.memory_space<vmem>>, vector<8x16xf32>,
      %c0_25 = arith.constant 0 : index
      %c0_26 = arith.constant 0 : index
      %42 = vector.load %arg7[%c0_25, %c0_26] : memref<8x1xf32, #tpu.memory_space<vmem>>, vector<8x1xf32>
      tpu.vector_store %arg7[%c0_25, %c0_26], %22 {strides = array<i32>} : memref<8x1xf32, #tpu.memory_space<vmem>>, vector<8x1xf32>,
      %c0_27 = arith.constant 0 : index
      %c0_28 = arith.constant 0 : index
      %43 = vector.load %arg9[%c0_27, %c0_28] : memref<8x16xf32, #tpu.memory_space<vmem>>, vector<8x16xf32>
      %c0_29 = arith.constant 0 : index
      %c0_30 = arith.constant 0 : index
      %44 = vector.load %arg8[%c0_29, %c0_30] : memref<8x1xf32, #tpu.memory_space<vmem>>, vector<8x1xf32>
      %45 = vector.broadcast %44 : vector<8x1xf32> to vector<8x16xf32>
      %46 = arith.divf %43, %45 : vector<8x16xf32>
      %c0_31 = arith.constant 0 : index
      %c0_32 = arith.constant 0 : index
      %c0_33 = arith.constant 0 : index
      %47 = vector.load %arg6[%c0_31, %c0_32, %c0_33] : memref<1x8x16xf32, #tpu.memory_space<vmem>>, vector<1x8x16xf32>
      %48 = vector.shape_cast %47 : vector<1x8x16xf32> to vector<8x16xf32>
      %49 = vector.shape_cast %46 : vector<8x16xf32> to vector<1x8x16xf32>
      tpu.vector_store %arg6[%c0_31, %c0_32, %c0_33], %49 {strides = array<i32>} : memref<1x8x16xf32, #tpu.memory_space<vmem>>, vector<1x8x16xf32>,
    } else {
    }
    return
  }
  func.func @transform_0(%arg0: i32, %arg1: i32, %arg2: i32) -> (i32, i32, i32) {
    %c0_i32 = arith.constant 0 : i32
    %c0_i32_0 = arith.constant 0 : i32
    return %arg0, %arg1, %c0_i32 : i32, i32, i32
  }
  func.func @transform_1(%arg0: i32, %arg1: i32, %arg2: i32) -> (i32, i32, i32) {
    %0 = arith.minsi %arg2, %arg1 : i32
    %c0_i32 = arith.constant 0 : i32
    %c0_i32_0 = arith.constant 0 : i32
    return %arg0, %0, %c0_i32 : i32, i32, i32
  }
  func.func @transform_2(%arg0: i32, %arg1: i32, %arg2: i32) -> (i32, i32, i32) {
    %0 = arith.minsi %arg2, %arg1 : i32
    %c0_i32 = arith.constant 0 : i32
    %c0_i32_0 = arith.constant 0 : i32
    return %arg0, %0, %c0_i32 : i32, i32, i32
  }
  func.func @transform_3(%arg0: i32, %arg1: i32, %arg2: i32) -> (i32, i32, i32) {
    %c0_i32 = arith.constant 0 : i32
    %c0_i32_0 = arith.constant 0 : i32
    return %arg0, %arg1, %c0_i32 : i32, i32, i32
  }
}

</mosaic_0001>

<bundles_post_ra>
// kernel: tpu_custom_call.1
= control target key start
LH: loop header
LB: loop body
LE: loop exit
PB: predicated region body
PF: predicated region fallthrough
CT: control target
= control target key end

     0   :  { %s1460_s0 = inlined_call_operand.hbm [shape: f32[2,8,16], index: 0, kind: input, shape index: {}]   ;;  %s1461_s1 = inlined_call_operand.hbm [shape: f32[2,8,16], index: 1, kind: input, shape index: {}]   ;;  %s1462_s2 = inlined_call_operand.hbm [shape: f32[2,8,16], index: 2, kind: input, shape index: {}]   ;;  %s1463_s3 = inlined_call_operand.hbm [shape: f32[2,8,16], index: 3, kind: output, shape index: {}]  }
   0x1   :  { %1469 = sst [smem:[#allocation18_spill]] %s1461_s1 }
   0x2   :  { %8 = vsyncpa [#allocation6], 0 }
   0x3   :  { %10 = vsyncpa [#allocation6 + $0x1], 0 }
   0x4   :  { %11 = vsyncpa [#allocation9], 0 }
   0x5   :  { %13 = vsyncpa [#allocation9 + $0x1], 0 }
   0x6   :  { %14 = vsyncpa [#allocation7], 0 }
   0x7   :  { %16 = vsyncpa [#allocation7 + $0x1], 0  ;;  %s1184_s12 = smov 0   ;;  %s1186_s13 = smov 0  }
   0x8   :  { %s1188_s14 = smov 0   ;;  %s1190_s15 = smov 0  }
   0x9   :  { %s1192_s16 = smov 0   ;;  %s1194_s17 = smov 0  }
   0xa LB: > { %1470 = sst [smem:[#allocation15_spill]] %s1150_s16  ;;  %s1215_s18 = sadd.s32 4294967295, %s1154_s17   ;;  %s1154_s17 = sphi %s1194_s17, %s22_s17   ;;  %s1150_s16 = sphi %s1192_s16, %s1491_s16   ;;  %s1146_s15 = sphi %s1190_s15, %s1490_s15   ;;  %s1142_s14 = sphi %s1188_s14, %s1494_s14   ;;  %s1138_s13 = sphi %s1186_s13, %s1493_s13   ;;  %s1134_s12 = sphi %s1184_s12, %s1492_s12  }
   0xb   : > { %s856_s19 = sadd.s32 4294967294, %s1154_s17   ;;  %s41_s20 = sadd.s32 1, %s1150_s16 }
   0xc   : > { %s50_s21 = sadd.s32 1, %s1142_s14  ;;  %p43_p0 = scmp.ge.s32.totalorder %s41_s20, 2 }
   0xd   : > { %p57_p1 = scmp.ne.s32.totalorder %s1142_s14, %s1138_s13  ;;  %p58_p2 = scmp.eq.s32.totalorder %s1154_s17, 0 }
   0xe   : > { %p63_p3 = scmp.ne.s32.totalorder %s1138_s13, %s1134_s12  ;;  %s1496_s20 = smov (%p43_p0, %s41_s20), 0 }
   0xf   : > { %1471 = sst [smem:[#allocation16_spill]] %s1496_s20  ;;  %p1227_p4 = por %p58_p2, %p57_p1 }
  0x10   : > { %p64_p5 = scmp.eq.s32.totalorder %s1215_s18, 0  ;;  %s45_s23 = ssub.s32 %s1150_s16, %s1496_s20 }
  0x11   : > { %p153_p6 = scmp.eq.s32.totalorder %s1215_s18, 1  ;;  %p48_p7 = scmp.eq.s32.totalorder %s45_s23, 0 }
  0x12   : > { %p1235_p8 = por %p64_p5, %p63_p3  ;;  %p159_p10 = scmp.eq.s32.totalorder %s856_s19, 1 }
  0x13   : > { %p1239_p9 = por %p153_p6, %p57_p1  ;;  %p916_p13 = scmp.lt.s32.totalorder %s1154_s17, 2 }
  0x14   : > { %s1473_s24 = scalar_select %p1235_p8, 1, 0 }
  0x15   : > { %s1474_s25 = scalar_select %p1239_p9, 1, 0 }
  0x16   : > { %s1244_s26 = scalar_select %p48_p7, %s1142_s14, %s50_s21  }
  0x17   : > { %p1246_p11 = por %p159_p10, %p63_p3  ;;  %s179_s28 = sand.u32 1, %s1142_s14  }
  0x18   : > { %1475 = sst [smem:[#allocation17_spill]] %s1244_s26  ;;  %s1255_s29 = sshll.u32 %s179_s28, 3 }
  0x19   : > { %s1476_s27 = scalar_select %p1246_p11, 1, 0 }
  0x1a   : > { %s1258_s30 = sshll.u32 %s1150_s16, 7  ;;  %p1262_p0 = pnand %p916_p13, %p1227_p4 }
  0x1b   : > { %s198_s5 = sand.u32 1, %s1154_s17   ;;  %s1478_s1 = sld [smem:[#allocation18_spill]] }
  0x1c   : > { %s1477_s4 = scalar_select %p1262_p0, 1, 0 }
  0x1d   : > { %s202_s9 = scalar_lea.vmem [#allocation8], %s1255_s29  ;;  %s1278_s11 = scalar_lea.sflag [#allocation9], %s198_s5 }
  0x1e   : > { %s212_s10 = sshll.u32 %s202_s9, 4  ;;  %p1284_p4 = pneg %p1262_p0  ;;  %s1275_s10 = int_to_ptr.vmem [resolvable:$true] %s212_s10 }
  0x21   : > { %s1271_s8 = scalar_lea.hbm %s1478_s1, %s1258_s30  ;;  %s983_s6 = scalar_lea.hbm %s1478_s1, 256 }
  0x22   : > { %s978_s19 = scalar_lea.hbm %s1271_s8, 128  ;;  %p984_p7 = scmp.lt.u32.totalorder %s1271_s8, %s1478_s1 }
  0x23   : > { %p979_p3 = scmp.ne.s32.totalorder %s1271_s8, %s978_s19  ;;  %p985_p10 = scmp.lt.u32.totalorder %s983_s6, %s978_s19 }
  0x24   : > { %p987_p12 = scmp.lt.u32.totalorder %s978_s19, %s1271_s8 }
  0x25   : > { %p981_p5 = pnand %p1284_p4, %p979_p3  ;;  %p986_p13 = por %p985_p10, %p984_p7 }
  0x27   : > { %p982_p6 = pneg %p981_p5  ;;  %p988_p1 = por %p987_p12, %p986_p13 }
  0x29   : > { %p989_p2 = pnand %p988_p1, %p982_p6 }
  0x2b   : > { %992 = shalt.err (!%p989_p2)
}
  0x2c   : > { %s993_s5 = scalar_lea.vmem %s1275_s10, 128  ;;  %s1156_s22 = smov [#allocation8]  }
  0x2d   : > { %p994_p3 = scmp.ne.s32.totalorder %s1275_s10, %s993_s5  ;;  %s998_s23 = sshll.u32 %s1156_s22, 4  ;;  %s999_s23 = int_to_ptr.vmem [resolvable:$false] %s998_s23 }
  0x2e   : > { %s1000_s7 = scalar_lea.vmem %s999_s23, 256  ;;  %p1001_p9 = scmp.lt.s32.totalorder %s1275_s10, %s999_s23 }
  0x2f   : > { %p996_p5 = pnand %p994_p3, %p1284_p4  ;;  %p1002_p8 = scmp.lt.s32.totalorder %s1000_s7, %s993_s5 }
  0x31   : > { %p997_p11 = pneg %p996_p5  ;;  %p1003_p7 = por %p1002_p8, %p1001_p9 }
  0x33   : > { %p1004_p10 = pnand %p1003_p7, %p997_p11 }
  0x35   : > { %1007 = shalt.err (!%p1004_p10)
}
  0x36   : > { %908 = dma.hbm_to_vmem [thread:$0]  (!%p1262_p0), %s1271_s8, 128, %s1275_s10, %s1278_s11  }
  0x37   : > { %p1480_p12 = scmp.lt.s32.totalorder %s1154_s17, 3  ;;  %p1481_p1 = scmp.ge.s32.totalorder %s1154_s17, 1 }
  0x38   : > { %s1320_s5 = scalar_lea.hbm %s1460_s0, %s1258_s30  ;;  %s183_s22 = scalar_lea.vmem [#allocation5], %s1255_s29 }
  0x39   : > { %p1312_p2 = pnand %p1481_p1, %p1480_p12  ;;  %s191_s23 = sshll.u32 %s183_s22, 4  ;;  %s1323_s23 = int_to_ptr.vmem [resolvable:$true] %s191_s23 }
  0x3a   : > { %s1329_s7 = scalar_lea.hbm %s1462_s2, %s1258_s30  ;;  %s180_s1 = scalar_lea.sflag [#allocation6], %s179_s28 }
  0x3b   : > { %s1482_s19 = scalar_select %p1312_p2, 1, 0 }
  0x3c   : > { %s1008_s20 = scalar_lea.hbm %s1320_s5, 128  ;;  %s1013_s16 = scalar_lea.hbm %s1460_s0, 256 }
  0x3d   : > { %p1009_p8 = scmp.ne.s32.totalorder %s1320_s5, %s1008_s20  ;;  %p1014_p6 = scmp.lt.u32.totalorder %s1320_s5, %s1460_s0 }
  0x3e   : > { %p1015_p13 = scmp.lt.u32.totalorder %s1013_s16, %s1008_s20  ;;  %p1017_p5 = scmp.lt.u32.totalorder %s1008_s20, %s1320_s5 }
  0x3f   : > { %p1011_p9 = pnand %p1009_p8, %p1284_p4 }
  0x40   : > { %p1016_p3 = por %p1015_p13, %p1014_p6 }
  0x41   : > { %p1012_p11 = pneg %p1011_p9 }
  0x42   : > { %p1018_p7 = por %p1017_p5, %p1016_p3 }
  0x44   : > { %p1019_p10 = pnand %p1018_p7, %p1012_p11 }
  0x46   : > { %1022 = shalt.err (!%p1019_p10)
}
  0x47   : > { %s1023_s28 = scalar_lea.vmem %s1323_s23, 128  ;;  %s1157_s30 = smov [#allocation5]  }
  0x48   : > { %p1024_p12 = scmp.ne.s32.totalorder %s1323_s23, %s1023_s28  ;;  %s1028_s8 = sshll.u32 %s1157_s30, 4  ;;  %s1029_s8 = int_to_ptr.vmem [resolvable:$false] %s1028_s8 }
  0x49   : > { %s1030_s26 = scalar_lea.vmem %s1029_s8, 256  ;;  %p1031_p9 = scmp.lt.s32.totalorder %s1323_s23, %s1029_s8 }
  0x4a   : > { %p1026_p1 = pnand %p1024_p12, %p1284_p4  ;;  %p1032_p2 = scmp.lt.s32.totalorder %s1030_s26, %s1023_s28 }
  0x4c   : > { %p1027_p8 = pneg %p1026_p1  ;;  %p1033_p6 = por %p1032_p2, %p1031_p9 }
  0x4e   : > { %p1034_p13 = pnand %p1033_p6, %p1027_p8 }
  0x50   : > { %1037 = shalt.err (!%p1034_p13)
}
  0x51   : > { %905 = dma.hbm_to_vmem [thread:$0]  (!%p1262_p0), %s1320_s5, 128, %s1323_s23, %s180_s1  }
  0x52   : > { %s223_s16 = scalar_lea.vmem [#allocation10], %s1255_s29  ;;  %s1038_s10 = scalar_lea.hbm %s1329_s7, 128 }
  0x53   : > { %s233_s20 = sshll.u32 %s223_s16, 4  ;;  %p1039_p11 = scmp.ne.s32.totalorder %s1329_s7, %s1038_s10  ;;  %s234_s20 = int_to_ptr.vmem [resolvable:$true] %s233_s20 }
  0x54   : > { %s1043_s22 = scalar_lea.hbm %s1462_s2, 256  ;;  %p1044_p5 = scmp.lt.u32.totalorder %s1329_s7, %s1462_s2 }
  0x55   : > { %p1041_p2 = pnand %p1039_p11, %p1284_p4  ;;  %p1045_p7 = scmp.lt.u32.totalorder %s1043_s22, %s1038_s10 }
  0x56   : > { %p1047_p12 = scmp.lt.u32.totalorder %s1038_s10, %s1329_s7 }
  0x57   : > { %p1042_p3 = pneg %p1041_p2  ;;  %p1046_p10 = por %p1045_p7, %p1044_p5 }
  0x59   : > { %p1048_p1 = por %p1047_p12, %p1046_p10 }
  0x5b   : > { %p1049_p8 = pnand %p1048_p1, %p1042_p3 }
  0x5d   : > { %1052 = shalt.err (!%p1049_p8)
}
  0x5e   : > { %s1053_s1 = scalar_lea.vmem %s234_s20, 128  ;;  %s1158_s29 = smov [#allocation10]  }
  0x5f   : > { %p1054_p9 = scmp.ne.s32.totalorder %s234_s20, %s1053_s1  ;;  %s1058_s5 = sshll.u32 %s1158_s29, 4  ;;  %s1059_s5 = int_to_ptr.vmem [resolvable:$false] %s1058_s5 }
  0x60   : > { %s1060_s23 = scalar_lea.vmem %s1059_s5, 256  ;;  %p1061_p11 = scmp.lt.s32.totalorder %s234_s20, %s1059_s5 }
  0x61   : > { %p1056_p6 = pnand %p1054_p9, %p1284_p4  ;;  %p1062_p2 = scmp.lt.s32.totalorder %s1060_s23, %s1053_s1 }
  0x63   : > { %p1057_p13 = pneg %p1056_p6  ;;  %p1063_p0 = por %p1062_p2, %p1061_p11 }
  0x65   : > { %p1064_p5 = pnand %p1063_p0, %p1057_p13 }
  0x67   : > { %1067 = shalt.err (!%p1064_p5)
}
  0x68   : > { %p1483_p7 = scmp.ne.s32.totalorder %s1477_s4, 0  ;;  %p1484_p3 = scmp.ne.s32.totalorder %s1482_s19, 0 }
  0x69   : > { %s1376_s21 = sand.u32 (!%p1484_p3), 1, %s1138_s13   ;;  %p1485_p0 = scmp.ne.s32.totalorder (!%p1484_p3), %s1473_s24, 0 }
  0x6a   : > { %911 = dma.hbm_to_vmem [thread:$0]  (!%p1483_p7), %s1329_s7, 128, %s234_s20, %s1278_s11  }
  0x6b   : > { %242 = sbr.rel (%p1484_p3) target bundleno = 933 (0x3a5), region = 32  ;;  %s1379_s8 = sshll.u32 (!%p1484_p3), %s1376_s21, 3 }
  0x6c   : > { %s245_s26 = scalar_lea.sflag (!%p1484_p3), [#allocation6], %s1376_s21  ;;  %s248_s16 = scalar_lea.vmem (!%p1484_p3), [#allocation5], %s1379_s8 }
  0x72   : > { %1121 = dma.done.wait (%p1485_p0), %s245_s26, 128  }
  0x73   : > { %1123 = vsyncadd (%p1485_p0), %s245_s26, 4294967168  ;;  %s253_s4 = sand.u32 1, %s1215_s18   ;;  %s257_s19 = scalar_lea.vmem [#allocation8], %s1379_s8 }
  0x74   : > { %s254_s11 = scalar_lea.sflag [#allocation9], %s253_s4 }
  0x75   : > { %1125 = dma.done.wait (%p1485_p0), %s254_s11, 256  }
  0x76   : > { %1127 = vsyncadd (%p1485_p0), %s254_s11, 4294967040  ;;  %vm310_vm0 = vcmask 130048   ;;  %v1159_v0 = vmov 0.0   ;;  %vm1160_vm1 = vmmov 0   ;;  %v509_v1 = vld [vmem:[%s257_s19] sm:$0xff]  ;;  %v508_v2 = vld [vmem:[%s248_s16] sm:$0xff]  ;;  %v587_v4 = vlaneseq }
  0x77   : > { %884 = vmatprep.subr.mxu0 %v1159_v0  ;;  %311 = vst.msk [vmem:[#allocation4] sm:$0xff] %vm310_vm0, %v1159_v0  ;;  %886 = vmatprep.mubr.msk.f32.mxu0 %vm1160_vm1, %v1159_v0  ;;  %vm307_vm2 = vcmask 7168   ;;  %v1161_v3 = vmov -inf   ;;  %vm594_vm4 = vcmask 64512   ;;  %v1162_v11 = vmov 0   ;;  %s266_s18 = scalar_lea.vmem [#allocation10], %s1379_s8 }
  0x78   : > { %889 = vmatprep.subr.mxu1 %v1159_v0  ;;  %891 = vmatprep.mubr.msk.f32.mxu1 %vm1160_vm1, %v1159_v0  ;;  %308 = vst.msk [vmem:[#allocation2] sm:$0xff] %vm307_vm2, %v1161_v3  ;;  %309 = vst.msk [vmem:[#allocation3] sm:$0xff] %vm307_vm2, %v1159_v0  ;;  %v588_v5 = vshrl.u32 %v587_v4, 7  ;;  %v590_v6 = vand.u32 127, %v587_v4  ;;  %v625_v16 = vld [vmem:[%s266_s18] sm:$0xff]  ;;  %s877_s24 = sshll.u32 %s1146_s15, 7 }
  0x79   : > { %885 = vmatpush3.xpose.msk.msra.mxu0 %vm310_vm0, %v509_v1  ;;  %970 = vset.pattern.permute.xlu0 %v1162_v11  ;;  %s298_s7 = scalar_lea.vmem [#allocation11], %s1379_s8  ;;  %s1410_s9 = scalar_lea.hbm %s1463_s3, %s877_s24 }
  0x7a   : > { %vm591_vm3 = vcmp.ge.s32.totalorder %v588_v5, %v590_v6  ;;  %971 = vset.pattern.permute.xlu1 %v1162_v11  ;;  %890 = vmatpush3.msra.mxu1 %v625_v16  ;;  %s727_s20 = sshll.u32 %s298_s7, 4  ;;  %s713_s22 = scalar_lea.sflag [#allocation7], %s1376_s21  ;;  %s1412_s20 = int_to_ptr.vmem [resolvable:$true] %s727_s20 }
  0x7b   : > { %s1068_s28 = scalar_lea.vmem %s1412_s20, 128  ;;  %p1486_p10 = scmp.ne.s32.totalorder %s1474_s25, 0 }
  0x7c   : > { %887 = vmatmul.mubr.msk.f32.vlgmr.msra.gmra.mrb[0].mxu0 %vm310_vm0, %v508_v2  ;;  %p1069_p4 = scmp.ne.s32.totalorder %s1412_s20, %s1068_s28  ;;  %s1163_s15 = smov [#allocation11]  }
  0x7d   : > { %s1072_s30 = sshll.u32 %s1163_s15, 4  ;;  %s1073_s30 = int_to_ptr.vmem [resolvable:$false] %s1072_s30 }
  0x7e   : > { %v618_v29 = vld [vmem:[#allocation4] sm:$0xff]  ;;  %p1070_p12 = pnand %p1069_p4, %p1486_p10  ;;  %s1074_s1 = scalar_lea.vmem %s1073_s30, 256 }
  0x7f   : > { %v593_v12 = vld [vmem:[#allocation2] sm:$0xff]  ;;  %v610_v24 = vld [vmem:[#allocation3] sm:$0xff]  ;;  %p1075_p8 = scmp.lt.s32.totalorder %s1412_s20, %s1073_s30  ;;  %p1076_p9 = scmp.lt.s32.totalorder %s1074_s1, %s1068_s28 }
  0x80   : > { %p1071_p1 = pneg %p1070_p12 }
  0x81   : > { %p1077_p6 = por %p1076_p9, %p1075_p8 }
  0x83   : > { %p1078_p13 = pnand %p1077_p6, %p1071_p1 }
 0x14f   : > { %v583_v7 = vpop.f32.mrb[0].mxu0 }
 0x150   : > { %v592_v8 = vsel %vm591_vm3, %v583_v7, -inf  ;;  %v888_v9 = vpop.f32.mrb[1].mxu0 }
 0x151   : > { %v595_v10 = vsel %vm594_vm4, %v592_v8, -inf }
 0x152   : > { %596 = vmax.xlane.f32.xlu0 %v595_v10 }
 0x1df   : > { %v597_v13 = vpop.xlane.xlu0 %596 }
 0x1e0   : > { %v598_v14 = vmax.f32 %v593_v12, %v597_v13 }
 0x1e2   : > { %v599_v15 = vsub.f32 %v593_v12, %v598_v14  ;;  %701 = vst.msk [vmem:[#allocation2] sm:$0xff] %vm307_vm2, %v598_v14  ;;  %604 = vperm.xlu0 %970, %v598_v14  }
 0x1e4   : > { %v600_v22 = vmul.f32 1.442695, %v599_v15 }
 0x261   : > { %v605_v17 = vpop.permute.xlu0 %604 }
 0x262   : > { %v607_v18 = vsub.f32 %v592_v8, %v605_v17 }
 0x264   : > { %v608_v19 = vmul.f32 1.442695, %v607_v18 }
 0x266   : > { %972 = vpow2.f32 %v608_v19 }
 0x267   : > { %974 = vpow2.f32 %v600_v22 }
 0x270   : > { %v973_v20 = vpop.eup %972 }
 0x271   : > { %892 = vmatmul.mubr.msk.f32.vlgmr.msra.gmra.mrb[0].mxu1 %vm594_vm4, %v973_v20  ;;  %v612_v21 = vsel %vm594_vm4, %v973_v20, 0.0  ;;  %v975_v23 = vpop.eup %974 }
 0x272   : > { %613 = vadd.xlane.f32.xlu1 %v612_v21  ;;  %v611_v25 = vmul.f32 %v975_v23, %v610_v24 }
 0x283   : > { %621 = vperm.xlu1 %971, %v975_v23  }
 0x2ff   : > { %v614_v26 = vpop.xlane.xlu1 %613 }
 0x300   : > { %v615_v27 = vadd.f32 %v614_v26, %v611_v25 }
 0x302   : > { %617 = vst.msk [vmem:[#allocation3] sm:$0xff] %vm307_vm2, %v615_v27 }
 0x303   : > { %v622_v30 = vpop.permute.xlu1 %621 }
 0x304   : > { %v624_v31 = vmul.f32 %v622_v30, %v618_v29 }
 0x309   : > { %v703_v28 = vld [vmem:[#allocation3] sm:$0xff] }
 0x30a   : > { %706 = vperm.xlu1 %971, %v703_v28  }
 0x344   : > { %v695_v32 = vpop.f32.mrb[0].mxu1 }
 0x345   : > { %v699_v33 = vadd.f32 %v695_v32, %v624_v31  ;;  %v893_v34 = vpop.f32.mrb[1].mxu1 }
 0x347   : > { %700 = vst.msk [vmem:[#allocation4] sm:$0xff] %vm310_vm0, %v699_v33 }
 0x34e   : > { %v702_v37 = vld [vmem:[#allocation4] sm:$0xff] }
 0x389   : > { %v707_v35 = vpop.permute.xlu1 %706 }
 0x38a   : > { %976 = vrcp.f32 %v707_v35 }
 0x394   : > { %v977_v36 = vpop.eup %976 }
 0x395   : > { %v710_v38 = vmul.f32 %v977_v36, %v702_v37 }
 0x397   : > { %711 = vst.msk [vmem:[%s298_s7] sm:$0xff] %vm310_vm0, %v710_v38 }
 0x398   : > { %1081 = shalt.err (!%p1078_p13)
}
 0x399   : > { %s1082_s29 = scalar_lea.hbm %s1410_s9, 128  ;;  %s1086_s21 = scalar_lea.hbm %s1463_s3, 256 }
 0x39a   : > { %p1083_p11 = scmp.ne.s32.totalorder %s1410_s9, %s1082_s29  ;;  %p1087_p7 = scmp.lt.u32.totalorder %s1410_s9, %s1463_s3 }
 0x39b   : > { %p1088_p3 = scmp.lt.u32.totalorder %s1086_s21, %s1082_s29  ;;  %p1090_p4 = scmp.lt.u32.totalorder %s1082_s29, %s1410_s9 }
 0x39c   : > { %p1084_p2 = pnand %p1083_p11, %p1486_p10 }
 0x39d   : > { %p1089_p0 = por %p1088_p3, %p1087_p7 }
 0x39e   : > { %p1085_p5 = pneg %p1084_p2 }
 0x39f   : > { %p1091_p12 = por %p1090_p4, %p1089_p0 }
 0x3a1   : > { %p1092_p1 = pnand %p1091_p12, %p1085_p5 }
 0x3a3   : > { %1095 = shalt.err (!%p1092_p1)
}
 0x3a4   : > { %900 = dma.vmem_to_hbm [thread:$0]  (%p1486_p10), %s1412_s20, 128, %s1410_s9, %s713_s22  }
 0x3a5 PF: > { %s739_s16 = sand.u32 1, %s1134_s12   ;;  %p1487_p8 = scmp.ne.s32.totalorder %s1476_s27, 0 }
 0x3a6   : > { %p1488_p9 = scmp.ge.s32.totalorder %s1154_s17, 2  ;;  %s740_s4 = scalar_lea.sflag [#allocation7], %s739_s16 }
 0x3a8   : > { %p913_p6 = pnand %p1488_p9, %p1487_p8 }
 0x3aa   : > { %1129 = dma.done.wait (!%p913_p6), %s740_s4, 128  }
 0x3ab   : > { %1131 = vsyncadd (!%p913_p6), %s740_s4, 4294967168  ;;  %s22_s17 = sadd.s32 1, %s1154_s17   ;;  %s1489_s25 = sld [smem:[#allocation17_spill]] }
 0x3ac   : > { %p19_p13 = scmp.ge.s32.totalorder %s22_s17, 4   ;;  %s1490_s15 = sld [smem:[#allocation15_spill]] }
 0x3ad   : > { %s1491_s16 = sld [smem:[#allocation16_spill]]  ;;  %s1492_s12 = smov %s1138_s13 }
 0x3ae   : > { %s1493_s13 = smov %s1142_s14  ;;  %21 = sbr.rel (!%p19_p13) target bundleno = 10 (0xa), region = 113 }
 0x3b1   : > { %s1494_s14 = smov %s1489_s25 }
 0x3b5   :  { %745 = vsyncpa [#allocation6], 1 }
 0x3b6   :  { %747 = vsyncpa [#allocation6 + $0x1], 1 }
 0x3b7   :  { %748 = vsyncpa [#allocation9], 1 }
 0x3b8   :  { %750 = vsyncpa [#allocation9 + $0x1], 1 }
 0x3b9   :  { %751 = vsyncpa [#allocation7], 1 }
 0x3ba   :  { %753 = vsyncpa [#allocation7 + $0x1], 1 }

</bundles_post_ra>
